<compile_context>
chip_gen: v6e
topology: v6e:2x2x1
jax: 0.10.0
libtpu: 0.0.40
codegen_flags: <defaults>
</compile_context>

<pallas_src>
import jax
import jax.numpy as jnp
from jax.experimental import pallas as pl
from jax.experimental.pallas import tpu as pltpu


def _round_up(v, m):
    return ((v + m - 1) // m) * m


def _cls_seg_kernel(x_ref, w_ref, b_ref, o_ref):
    # x_ref: (C, TILE) pixel tile (spatial on lanes); w_ref: (K, C); b_ref: (K, 1)
    acc = jnp.dot(w_ref[...], x_ref[...], preferred_element_type=jnp.float32)
    o_ref[...] = (acc + b_ref[...]).astype(o_ref.dtype)


# Per-step HBM traffic target and VMEM budgets (bytes).
_TARGET_STEP_BYTES = 2 * 1024 * 1024        # amortize ~600-cycle grid-step overhead
_STREAM_VMEM_BUDGET = 32 * 1024 * 1024      # double-buffered x/out stream budget
_VMEM_LIMIT_CAP = 48 * 1024 * 1024          # below v7x's 64 MiB physical VMEM


def _pick_tile(P, C, K, itemsize):
    """Lane-dense spatial tile sized from a bytes-per-step budget."""
    bytes_per_col = (C + K) * itemsize                     # in + out bytes per pixel
    t_budget = -(-_TARGET_STEP_BYTES // bytes_per_col)     # >= ~2 MiB per grid step
    t_vmem = _STREAM_VMEM_BUDGET // (2 * bytes_per_col)    # double-buffered cap
    tile = max(128, min(t_budget, t_vmem))
    tile = min(_round_up(tile, 128), _round_up(P, 128))    # never exceed padded P
    return tile


def cls_seg_pallas(x_nchw, weight, bias):
    """1x1 conv (conv_seg) over an NCHW feature map via Pallas, NCHW-native.

    x_nchw : (N, C, H, W)   activation (f32 or bf16)
    weight : (K, C)         nn.Conv2d weight squeezed from (K, C, 1, 1)
    bias   : (K,)
    returns: (N, K, H, W) with x_nchw.dtype
    """
    N, C, H, W = x_nchw.shape
    K = weight.shape[0]
    P = H * W

    # Free reshape: NCHW is contiguous as (N, C, H*W).
    x = x_nchw.reshape(N, C, P)
    w = weight if weight.dtype == x.dtype else weight.astype(x.dtype)
    b = bias.astype(jnp.float32).reshape(K, 1)   # added in the f32 accumulator

    itemsize = jnp.dtype(x.dtype).itemsize
    tile = _pick_tile(P, C, K, itemsize)
    num_tiles = pl.cdiv(P, tile)   # ragged tail handled by Pallas boundary masking

    # Explicit scoped-VMEM request from the actual buffer sizes:
    #   double-buffered x/out stream + (conservatively double-counted) w/b.
    stream_bytes = 2 * (C + K) * tile * itemsize
    const_bytes = 2 * (K * C * itemsize + K * 4)
    vmem_limit = int(min(max(stream_bytes + const_bytes + (4 << 20), 16 << 20),
                         _VMEM_LIMIT_CAP))

    cost = pl.CostEstimate(
        flops=2 * N * P * C * K,
        transcendentals=0,
        bytes_accessed=N * P * (C + K) * itemsize + K * C * itemsize + K * 4,
    )

    out = pl.pallas_call(
        _cls_seg_kernel,
        out_shape=jax.ShapeDtypeStruct((N, K, P), x_nchw.dtype),
        grid_spec=pltpu.PrefetchScalarGridSpec(
            num_scalar_prefetch=0,
            # Spatial-tile axis first so it is the one split across v7x's two
            # TensorCores even when N == 1; both axes are independent.
            grid=(num_tiles, N),
            in_specs=[
                # Pixel tile: batch squeezed, full channel dim, lane-dense spatial.
                pl.BlockSpec((pl.Squeezed(), C, tile), lambda p, n: (n, 0, p)),
                # Weight / bias: same block every step -> stay resident in VMEM.
                pl.BlockSpec((K, C), lambda p, n: (0, 0)),
                pl.BlockSpec((K, 1), lambda p, n: (0, 0)),
            ],
            out_specs=pl.BlockSpec((pl.Squeezed(), K, tile),
                                   lambda p, n: (n, 0, p)),
        ),
        compiler_params=pltpu.CompilerParams(
            dimension_semantics=("parallel", "parallel"),
            vmem_limit_bytes=vmem_limit,
        ),
        cost_estimate=cost,
    )(x, w, b)

    return out.reshape(N, K, H, W)


class BaseDecodeHeadPallas:
    """JAX/Pallas port of the concrete parts of BaseDecodeHead (inference)."""

    def __init__(self, in_channels, head_width, *, num_classes, final_drop=0.1,
                 in_index=-1, input_transform=None, key=None):
        # TODO(synk): 'resize_concat' / 'multiple_select' input transforms
        # (bilinear resize + concat) not implemented; only the None path is.
        assert input_transform is None, "only single-select path implemented here"
        self.in_channels = in_channels
        self.head_width = head_width
        # Matches reference bookkeeping: self.num_classes = num_classes + 1,
        # while conv_seg itself outputs `num_classes` channels
        # (nn.Conv2d(head_width, num_classes, kernel_size=1)).
        self.num_classes = num_classes + 1
        self.in_index = in_index
        self.input_transform = input_transform
        self.final_drop = final_drop
        # init_weights(): normal_init(mean=0, std=0.01), bias=0.
        key = jax.random.PRNGKey(0) if key is None else key
        self.conv_seg_w = 0.01 * jax.random.normal(
            key, (num_classes, head_width), dtype=jnp.float32)
        self.conv_seg_b = jnp.zeros((num_classes,), dtype=jnp.float32)
        self._w_cache = {}   # conv_seg weight cast once per activation dtype
        # TODO(synk): training-mode Dropout2d (channel-wise Bernoulli masking)
        # not implemented; at inference Dropout2d is identity, which is computed.

    def _weight_for(self, dtype):
        dt = jnp.dtype(dtype)
        w = self._w_cache.get(dt)
        if w is None:
            w = self.conv_seg_w.astype(dt)
            self._w_cache[dt] = w
        return w

    def _transform_inputs(self, inputs):
        # input_transform is None -> single feature-map select.
        return inputs[self.in_index]

    def cls_seg(self, feat):
        return cls_seg_pallas(feat, self._weight_for(feat.dtype), self.conv_seg_b)

    def forward_infer(self, inputs):
        feat = self._transform_inputs(inputs)
        return self.cls_seg(feat)


if __name__ == "__main__":
    key = jax.random.PRNGKey(0)
    k_feat, k_w = jax.random.split(key)

    N, head_width, H, W = 2, 32, 16, 16
    num_classes = 8

    head = BaseDecodeHeadPallas(in_channels=head_width, head_width=head_width,
                                num_classes=num_classes, key=k_w)

    # Multi-level features list; only the last one (in_index=-1) is used.
    feat = jax.random.normal(k_feat, (N, head_width, H, W), dtype=jnp.float32)
    out = jax.block_until_ready(head.forward_infer([feat]))
    assert out.shape == (N, num_classes, H, W), out.shape

    ref = (jnp.einsum("nchw,kc->nkhw", feat, head.conv_seg_w)
           + head.conv_seg_b[None, :, None, None])
    assert jnp.allclose(out, ref, atol=1e-5, rtol=1e-5)

    # Ragged spatial extent (H*W = 143, not a multiple of 128): exercises the
    # no-pad boundary-masking path. Safe because each output pixel depends only
    # on its own input pixel and the overhanging output lanes are never stored.
    H2, W2 = 13, 11
    feat2 = jax.random.normal(k_feat, (N, head_width, H2, W2), dtype=jnp.float32)
    out2 = jax.block_until_ready(head.forward_infer([feat2]))
    ref2 = (jnp.einsum("nchw,kc->nkhw", feat2, head.conv_seg_w)
            + head.conv_seg_b[None, :, None, None])
    assert out2.shape == (N, num_classes, H2, W2), out2.shape
    assert jnp.allclose(out2, ref2, atol=1e-5, rtol=1e-5)

    # bf16 activation/output streams (halve HBM traffic); accumulation stays f32.
    feat_bf16 = feat.astype(jnp.bfloat16)
    out_bf16 = jax.block_until_ready(head.forward_infer([feat_bf16]))
    assert out_bf16.dtype == jnp.bfloat16
    assert jnp.allclose(out_bf16.astype(jnp.float32), ref, atol=2e-2, rtol=2e-2)

    print("KERNEL_OK")
</pallas_src>

<mosaic_0001>
module attributes {stable_mosaic.version = 11 : i64} {
  func.func @_cls_seg_kernel(%arg0: i32, %arg1: i32, %arg2: memref<1x32x256xf32, #tpu.memory_space<vmem>>, %arg3: memref<8x32xf32, #tpu.memory_space<vmem>>, %arg4: memref<8x1xf32, #tpu.memory_space<vmem>>, %arg5: memref<1x8x256xf32, #tpu.memory_space<vmem>>) attributes {dimension_semantics = [#tpu.dimension_semantics<parallel>, #tpu.dimension_semantics<parallel>], iteration_bounds = array<i64: 1, 2>, scalar_prefetch = 0 : i64, scratch_operands = 0 : i64, tpu.core_type = #tpu.core_type<tc>, window_params = [{transform_indices = @transform_0, window_bounds = array<i64: 1, 32, 256>}, {pipeline_mode = #tpu.pipeline_mode<synchronous>, transform_indices = @transform_1, window_bounds = array<i64: 8, 32>}, {pipeline_mode = #tpu.pipeline_mode<synchronous>, transform_indices = @transform_2, window_bounds = array<i64: 8, 1>}, {transform_indices = @transform_3, window_bounds = array<i64: 1, 8, 256>}]} {
    %c0 = arith.constant 0 : index
    %c0_0 = arith.constant 0 : index
    %0 = vector.load %arg3[%c0, %c0_0] : memref<8x32xf32, #tpu.memory_space<vmem>>, vector<8x32xf32>
    %c0_1 = arith.constant 0 : index
    %c0_2 = arith.constant 0 : index
    %c0_3 = arith.constant 0 : index
    %1 = vector.load %arg2[%c0_1, %c0_2, %c0_3] : memref<1x32x256xf32, #tpu.memory_space<vmem>>, vector<1x32x256xf32>
    %2 = vector.shape_cast %1 : vector<1x32x256xf32> to vector<32x256xf32>
    %cst = arith.constant dense<0.000000e+00> : vector<8x256xf32>
    %3 = tpu.matmul %0, %2, %cst {dimension_numbers = #tpu.dot_dimension_numbers<[1], [0], [0], [1], [0, 0, 1, 1], [], []>} : vector<8x32xf32>, vector<32x256xf32>, vector<8x256xf32> -> vector<8x256xf32>
    %c0_4 = arith.constant 0 : index
    %c0_5 = arith.constant 0 : index
    %4 = vector.load %arg4[%c0_4, %c0_5] : memref<8x1xf32, #tpu.memory_space<vmem>>, vector<8x1xf32>
    %5 = vector.broadcast %4 : vector<8x1xf32> to vector<8x256xf32>
    %6 = arith.addf %3, %5 : vector<8x256xf32>
    %c0_6 = arith.constant 0 : index
    %c0_7 = arith.constant 0 : index
    %c0_8 = arith.constant 0 : index
    %7 = vector.load %arg5[%c0_6, %c0_7, %c0_8] : memref<1x8x256xf32, #tpu.memory_space<vmem>>, vector<1x8x256xf32>
    %8 = vector.shape_cast %7 : vector<1x8x256xf32> to vector<8x256xf32>
    %9 = vector.shape_cast %6 : vector<8x256xf32> to vector<1x8x256xf32>
    tpu.vector_store %arg5[%c0_6, %c0_7, %c0_8], %9 {strides = array<i32>} : memref<1x8x256xf32, #tpu.memory_space<vmem>>, vector<1x8x256xf32>,
    return
  }
  func.func @transform_0(%arg0: i32, %arg1: i32) -> (i32, i32, i32) {
    %c0_i32 = arith.constant 0 : i32
    %c0_i32_0 = arith.constant 0 : i32
    return %arg1, %c0_i32, %arg0 : i32, i32, i32
  }
  func.func @transform_1(%arg0: i32, %arg1: i32) -> (i32, i32) {
    %c0_i32 = arith.constant 0 : i32
    %c0_i32_0 = arith.constant 0 : i32
    %c0_i32_1 = arith.constant 0 : i32
    return %c0_i32, %c0_i32_0 : i32, i32
  }
  func.func @transform_2(%arg0: i32, %arg1: i32) -> (i32, i32) {
    %c0_i32 = arith.constant 0 : i32
    %c0_i32_0 = arith.constant 0 : i32
    %c0_i32_1 = arith.constant 0 : i32
    return %c0_i32, %c0_i32_0 : i32, i32
  }
  func.func @transform_3(%arg0: i32, %arg1: i32) -> (i32, i32, i32) {
    %c0_i32 = arith.constant 0 : i32
    %c0_i32_0 = arith.constant 0 : i32
    return %arg1, %c0_i32, %arg0 : i32, i32, i32
  }
}

</mosaic_0001>

<bundles_post_ra>
// kernel: tpu_custom_call.1
= control target key start
LH: loop header
LB: loop body
LE: loop exit
PB: predicated region body
PF: predicated region fallthrough
CT: control target
= control target key end

     0   :  { %8 = vsyncpa [#allocation3], 0  ;;  %s762_s0 = inlined_call_operand.hbm [shape: f32[2,32,256], index: 0, kind: input, shape index: {}]   ;;  %s763_s1 = inlined_call_operand.vmem [shape: f32[8,32], index: 1, kind: input, shape index: {}]   ;;  %s764_s2 = inlined_call_operand.vmem [shape: f32[8,1], index: 2, kind: input, shape index: {}]   ;;  %s765_s3 = inlined_call_operand.hbm [shape: f32[2,8,256], index: 3, kind: output, shape index: {}]  }
   0x1   :  { %10 = vsyncpa [#allocation3 + $0x1], 0 }
   0x2   :  { %11 = vsyncpa [#allocation4], 0 }
   0x3   :  { %13 = vsyncpa [#allocation4 + $0x1], 0  ;;  %s623_s12 = smov 0   ;;  %s625_s13 = smov 0  }
   0x4   :  { %s627_s14 = smov 0   ;;  %s629_s15 = smov 0  }
   0x5   :  { %s631_s16 = smov 0   ;;  %s633_s17 = smov 0  }
   0x6 LB: > { %s402_s18 = sadd.s32 4294967295, %s595_s17   ;;  %s403_s19 = sadd.s32 4294967294, %s595_s17   ;;  %s595_s17 = sphi %s633_s17, %s19_s17   ;;  %s591_s16 = sphi %s631_s16, %s776_s16   ;;  %s587_s15 = sphi %s629_s15, %s775_s15   ;;  %s583_s14 = sphi %s627_s14, %s774_s14   ;;  %s579_s13 = sphi %s625_s13, %s773_s13   ;;  %s575_s12 = sphi %s623_s12, %s772_s12  }
   0x7   : > { %s28_s20 = sadd.s32 1, %s591_s16  ;;  %s40_s21 = sadd.s32 1, %s583_s14 }
   0x8   : > { %p29_p0 = scmp.ge.s32.totalorder %s28_s20, 2  ;;  %p47_p1 = scmp.ne.s32.totalorder %s583_s14, %s579_s13 }
   0x9   : > { %p48_p2 = scmp.eq.s32.totalorder %s595_s17, 0  ;;  %p53_p3 = scmp.ne.s32.totalorder %s579_s13, %s575_s12 }
   0xa   : > { %s778_s20 = smov (%p29_p0, %s28_s20), 0  ;;  %p54_p5 = scmp.eq.s32.totalorder %s402_s18, 0 }
   0xb   : > { %p664_p4 = por %p48_p2, %p47_p1  ;;  %s35_s23 = ssub.s32 %s591_s16, %s778_s20 }
   0xc   : > { %p121_p6 = scmp.eq.s32.totalorder %s402_s18, 1  ;;  %p38_p7 = scmp.eq.s32.totalorder %s35_s23, 0 }
   0xd   : > { %p670_p8 = por %p54_p5, %p53_p3  ;;  %p127_p10 = scmp.eq.s32.totalorder %s403_s19, 1 }
   0xe   : > { %p674_p9 = por %p121_p6, %p47_p1  ;;  %p432_p13 = scmp.lt.s32.totalorder %s595_s17, 2 }
   0xf   : > { %s679_s26 = scalar_select %p38_p7, %s583_s14, %s40_s21  }
  0x10   : > { %p681_p11 = por %p127_p10, %p53_p3  ;;  %s153_s28 = sand.u32 1, %s583_s14  }
  0x11   : > { %s406_s29 = sshll.u32 %s153_s28, 6  ;;  %s418_s30 = sshll.u32 %s591_s16, 10 }
  0x12   : > { %s165_s6 = scalar_lea.hbm %s762_s0, %s418_s30  ;;  %s157_s7 = scalar_lea.vmem [#allocation2], %s406_s29 }
  0x13   : > { %s166_s8 = sshll.u32 %s157_s7, 4  ;;  %p694_p0 = pnand %p432_p13, %p664_p4  ;;  %s167_s8 = int_to_ptr.vmem [resolvable:$true] %s166_s8 }
  0x14   : > { %p409_p1 = scmp.ge.s32.totalorder %s595_s17, 1  ;;  %s154_s10 = scalar_lea.sflag [#allocation3], %s153_s28 }
  0x15   : > { %p489_p2 = pneg %p694_p0  ;;  %s500_s11 = scalar_lea.vmem %s167_s8, 1024 }
  0x16   : > { %p501_p3 = scmp.ne.s32.totalorder %s167_s8, %s500_s11  ;;  %s597_s18 = smov [#allocation2]  }
  0x17   : > { %s505_s19 = sshll.u32 %s597_s18, 4  ;;  %s506_s19 = int_to_ptr.vmem [resolvable:$false] %s505_s19 }
  0x18   : > { %p503_p5 = pnand %p501_p3, %p489_p2  ;;  %s507_s21 = scalar_lea.vmem %s506_s19, 2048 }
  0x19   : > { %p508_p7 = scmp.lt.s32.totalorder %s167_s8, %s506_s19  ;;  %p509_p10 = scmp.lt.s32.totalorder %s507_s21, %s500_s11 }
  0x1a   : > { %p504_p6 = pneg %p503_p5 }
  0x1b   : > { %p510_p12 = por %p509_p10, %p508_p7 }
  0x1d   : > { %p511_p4 = pnand %p510_p12, %p504_p6 }
  0x1f   : > { %514 = shalt.err (!%p511_p4)
}
  0x20   : > { %s598_s22 = smov 256   ;;  %s599_s23 = smov 16  }
  0x21   : > { %427 = dma.hbm_to_vmem [thread:$0]  (!%p694_p0), %s165_s6, 1024, %s167_s8, %s154_s10, %s598_s22, %s598_s22, %s599_s23  }
  0x22   : > { %p174_p13 = scmp.lt.s32.totalorder %s595_s17, 3 }
  0x24   : > { %p175_p2 = pnand %p409_p1, %p174_p13 }
  0x25   : > { %s707_s28 = sand.u32 (!%p175_p2), 1, %s579_s13  }
  0x26   : > { %178 = sbr.rel (%p175_p2) target bundleno = 264 (0x108), region = 32  ;;  %s410_s29 = sshll.u32 (!%p175_p2), %s707_s28, 6 }
  0x27   : > { %s181_s30 = scalar_lea.sflag (!%p175_p2), [#allocation3], %s707_s28  ;;  %s184_s4 = scalar_lea.vmem (!%p175_p2), [#allocation2], %s410_s29 }
  0x2b   : > { %566 = dma.done.wait (%p670_p8), %s181_s30, 1024  }
  0x2c   : > { %568 = vsyncadd (%p670_p8), %s181_s30, 4294966272  ;;  %v600_v0 = vmov 0.0   ;;  %v601_v1 = vmov 0   ;;  %v217_v2 = vld [vmem:[%s184_s4 + $0x38] sm:$0xff]  ;;  %v216_v3 = vld [vmem:[%s184_s4 + $0x30] sm:$0xff]  ;;  %vm224_vm0 = vcmask 261120  }
  0x2d   : > { %292 = vmatprep.mubr.f32.mxu0 %v600_v0  ;;  %486 = vset.pattern.permute.xlu0 %v601_v1  ;;  %v215_v4 = vld [vmem:[%s184_s4 + $0x28] sm:$0xff]  ;;  %v214_v5 = vld [vmem:[%s184_s4 + $0x20] sm:$0xff]  ;;  %v213_v6 = vld [vmem:[%s184_s4 + $0x18] sm:$0xff]  ;;  %s411_s8 = sshll.u32 %s707_s28, 4  ;;  %s419_s9 = sshll.u32 %s587_s15, 8 }
  0x2e   : > { %252 = vmatprep.subr.mxu0 %v217_v2  ;;  %v212_v7 = vld [vmem:[%s184_s4 + $0x10] sm:$0xff]  ;;  %v218_v8 = vld [vmem:[%s764_s2] sm:$0xff]  ;;  %v211_v9 = vld [vmem:[%s184_s4 + $0x8] sm:$0xff]  ;;  %s206_s10 = scalar_lea.vmem [#allocation5], %s411_s8  ;;  %s316_s21 = scalar_lea.hbm %s765_s3, %s419_s9 }
  0x2f   : > { %253 = vmatpush1.msra.mxu0 %v216_v3  ;;  %221 = vperm.xlu0 %486, %v218_v8   ;;  %v210_v10 = vld [vmem:[%s184_s4] sm:$0xff]  ;;  %s318_s11 = sshll.u32 %s206_s10, 4  ;;  %s302_s22 = scalar_lea.sflag [#allocation4], %s707_s28  ;;  %s319_s11 = int_to_ptr.vmem [resolvable:$true] %s318_s11 }
  0x30   : > { %254 = vmatprep.subr.mxu0 %v215_v4  ;;  %v209_v11 = vld [vmem:[%s763_s1] sm:$0xff]  ;;  %s515_s23 = scalar_lea.vmem %s319_s11, 256  ;;  %s602_s29 = smov [#allocation5]  }
  0x31   : > { %255 = vmatpush1.msra.mxu0 %v214_v5  ;;  %p516_p8 = scmp.ne.s32.totalorder %s319_s11, %s515_s23  ;;  %s519_s15 = sshll.u32 %s602_s29, 4  ;;  %s520_s15 = int_to_ptr.vmem [resolvable:$false] %s519_s15 }
  0x32   : > { %256 = vmatprep.subr.mxu0 %v213_v6  ;;  %s521_s30 = scalar_lea.vmem %s520_s15, 512  ;;  %p522_p1 = scmp.lt.s32.totalorder %s319_s11, %s520_s15 }
  0x33   : > { %257 = vmatpush1.msra.mxu0 %v212_v7  ;;  %p517_p12 = pnand %p516_p8, %p674_p9  ;;  %p523_p3 = scmp.lt.s32.totalorder %s521_s30, %s515_s23 }
  0x34   : > { %258 = vmatprep.subr.mxu0 %v211_v9 }
  0x35   : > { %259 = vmatpush1.msra.mxu0 %v210_v10  ;;  %p518_p0 = pneg %p517_p12  ;;  %p524_p5 = por %p523_p3, %p522_p1 }
  0x36   : > { %412 = vmatmul.mubr.msk.f32.vlgmr.msra.gmra.mxu0 %vm224_vm0, %v209_v11 }
  0x37   : > { %p525_p6 = pnand %p524_p5, %p518_p0 }
  0xaa   : > { %v222_v12 = vpop.permute.xlu0 %221 }
  0xf6   : > { %v294_v13 = vpop.f32.mrf.mxu0 }
  0xf7   : > { %v295_v14 = vadd.f32 %v294_v13, %v222_v12 }
  0xf8   : > { %v296_v15 = vpop.f32.mrf.mxu0 }
  0xf9   : > { %299 = vst [vmem:[%s206_s10] sm:$0xff] %v295_v14  ;;  %v297_v16 = vadd.f32 %v296_v15, %v222_v12 }
  0xfb   : > { %300 = vst [vmem:[%s206_s10 + $0x8] sm:$0xff] %v297_v16 }
  0xfc   : > { %528 = shalt.err (!%p525_p6)
}
  0xfd   : > { %s529_s4 = scalar_lea.hbm %s316_s21, 256  ;;  %s533_s6 = scalar_lea.hbm %s765_s3, 512 }
  0xfe   : > { %p530_p7 = scmp.ne.s32.totalorder %s316_s21, %s529_s4  ;;  %p534_p13 = scmp.lt.s32.totalorder %s316_s21, %s765_s3 }
  0xff   : > { %p535_p2 = scmp.lt.s32.totalorder %s533_s6, %s529_s4 }
 0x100   : > { %p531_p10 = pnand %p530_p7, %p674_p9 }
 0x101   : > { %p536_p8 = por %p535_p2, %p534_p13 }
 0x102   : > { %p532_p4 = pneg %p531_p10 }
 0x104   : > { %p537_p12 = pnand %p536_p8, %p532_p4 }
 0x106   : > { %540 = shalt.err (!%p537_p12)
}
 0x107   : > { %422 = dma.vmem_to_hbm [thread:$0]  (%p674_p9), %s319_s11, 256, %s316_s21, %s302_s22  }
 0x108 PF: > { %s330_s8 = sand.u32 1, %s575_s12   ;;  %p771_p0 = scmp.ge.s32.totalorder %s595_s17, 2 }
 0x109   : > { %s331_s9 = scalar_lea.sflag [#allocation4], %s330_s8 }
 0x10a   : > { %p429_p1 = pnand %p771_p0, %p681_p11 }
 0x10c   : > { %p430_p3 = pneg %p429_p1 }
 0x10e   : > { %570 = dma.done.wait (%p430_p3), %s331_s9, 256  }
 0x10f   : > { %572 = vsyncadd (%p430_p3), %s331_s9, 4294967040  ;;  %s19_s17 = sadd.s32 1, %s595_s17   ;;  %s772_s12 = smov %s579_s13 }
 0x110   : > { %p16_p5 = scmp.ge.s32.totalorder %s19_s17, 4   ;;  %s773_s13 = smov %s583_s14 }
 0x111   : > { %s774_s14 = smov %s679_s26  ;;  %s775_s15 = smov %s591_s16 }
 0x112   : > { %s776_s16 = smov %s778_s20  ;;  %18 = sbr.rel (!%p16_p5) target bundleno = 6 (0x6), region = 77 }
 0x117   :  { %336 = vsyncpa [#allocation3], 1 }
 0x118   :  { %338 = vsyncpa [#allocation3 + $0x1], 1 }
 0x119   :  { %339 = vsyncpa [#allocation4], 1 }
 0x11a   :  { %341 = vsyncpa [#allocation4 + $0x1], 1 }

</bundles_post_ra>
